<compile_context>
chip_gen: v6e
topology: v6e:2x2x1
jax: 0.10.0
libtpu: 0.0.40
codegen_flags: <defaults>
</compile_context>

<pallas_src>
import jax
import jax.numpy as jnp
from jax.experimental import pallas as pl
from jax.experimental.pallas import tpu as pltpu

# ---------------- model config (hypernet_layers = 2) ----------------
N_AGENTS = 4
STATE_DIM = 32
EMBED_DIM = 32
HYPERNET_EMBED = 64
BS = 2
T = 8            # episode-length dim that forward flattens

H = HYPERNET_EMBED
E = EMBED_DIM
A = N_AGENTS

# fused first-layer columns: [wh1 | wf1 | wv1 | wb1] + zero padding
OFF_WH1 = 0
OFF_WF1 = H
OFF_WV1 = 2 * H
OFF_B1 = 2 * H + E
FUSED1_DIM = 256                 # 192 useful, padded to 2x128 lanes (MXU fill on v6e/v7x)

# fused second-layer columns: [w1 (A*E) | w_final (E) | v (1)] + zero padding
COL_W1 = 0
COL_WF = A * E
COL_V = A * E + E
FUSED2_DIM = 256                 # 161 useful, padded

MAX_ROW_TILE = 512               # rows per grid step for large inputs


def _round_up(x, m):
    return (x + m - 1) // m * m


def qmixer_kernel(states_ref, qs_ref, w1p_ref, b1p_ref, w2p_ref, b2p_ref, out_ref):
    states = states_ref[...]                                   # (TB, S)
    qs = qs_ref[...]                                           # (TB, A)

    # fused first layer: states @ [wh1 | wf1 | wv1 | wb1] + biases
    h = jnp.dot(states, w1p_ref[...],
                preferred_element_type=jnp.float32) + b1p_ref[...]          # (TB, 256)
    b1 = h[:, OFF_B1:OFF_B1 + E]          # hyper_b_1 output: NO ReLU
    h = jnp.maximum(h, 0.0)               # ReLU (harmless on b1/pad cols: zero rows in w2p)

    # fused second layer (block diagonal): [hyper_w_1[2] | hyper_w_final[2] | V[2]]
    z = jnp.dot(h, w2p_ref[...],
                preferred_element_type=jnp.float32) + b2p_ref[...]          # (TB, 256)
    w1 = jnp.abs(z[:, COL_W1:COL_W1 + A * E])                  # (TB, A*E)
    w_final = jnp.abs(z[:, COL_WF:COL_WF + E])                 # (TB, E)
    v = z[:, COL_V:COL_V + 1]                                  # (TB, 1)

    # hidden = elu(bmm(agent_qs, w1) + b1): per-row contraction over agents
    mixed = b1
    for a in range(A):
        mixed = mixed + qs[:, a:a + 1] * w1[:, a * E:(a + 1) * E]
    # ELU (alpha=1) with clamped exp argument to avoid inf intermediates
    hidden = jnp.where(mixed > 0.0, mixed, jnp.exp(jnp.minimum(mixed, 0.0)) - 1.0)

    # y = bmm(hidden, w_final) + v, written lane-dense as one (1, row_tile) row
    y = jnp.sum(hidden * w_final, axis=-1, keepdims=True) + v  # (TB, 1)
    out_ref[...] = jnp.transpose(y).astype(out_ref.dtype)      # (1, TB)


def pack_params(params):
    """Fuse the 14 Linear weights/biases into 4 padded arrays for the kernel."""
    (wh1, bh1, wh2, bh2, wb1, bb1, wf1, bf1, wf2, bf2, wv1, bv1, wv2, bv2) = params
    f32 = jnp.float32

    w_first = jnp.zeros((STATE_DIM, FUSED1_DIM), f32)
    w_first = w_first.at[:, OFF_WH1:OFF_WH1 + H].set(wh1)
    w_first = w_first.at[:, OFF_WF1:OFF_WF1 + H].set(wf1)
    w_first = w_first.at[:, OFF_WV1:OFF_WV1 + E].set(wv1)
    w_first = w_first.at[:, OFF_B1:OFF_B1 + E].set(wb1)

    b_first = jnp.zeros((1, FUSED1_DIM), f32)
    b_first = b_first.at[:, OFF_WH1:OFF_WH1 + H].set(bh1)
    b_first = b_first.at[:, OFF_WF1:OFF_WF1 + H].set(bf1)
    b_first = b_first.at[:, OFF_WV1:OFF_WV1 + E].set(bv1)
    b_first = b_first.at[:, OFF_B1:OFF_B1 + E].set(bb1)

    w_second = jnp.zeros((FUSED1_DIM, FUSED2_DIM), f32)
    w_second = w_second.at[OFF_WH1:OFF_WH1 + H, COL_W1:COL_W1 + A * E].set(wh2)
    w_second = w_second.at[OFF_WF1:OFF_WF1 + H, COL_WF:COL_WF + E].set(wf2)
    w_second = w_second.at[OFF_WV1:OFF_WV1 + E, COL_V:COL_V + 1].set(wv2)

    b_second = jnp.zeros((1, FUSED2_DIM), f32)
    b_second = b_second.at[:, COL_W1:COL_W1 + A * E].set(bh2)
    b_second = b_second.at[:, COL_WF:COL_WF + E].set(bf2)
    b_second = b_second.at[:, COL_V:COL_V + 1].set(bv2)

    return w_first, b_first, w_second, b_second


def qmixer_forward(agent_qs, states, params):
    """agent_qs: (bs, T, n_agents), states: (bs, T, state_dim) -> q_tot: (bs, T, 1)"""
    bs = agent_qs.shape[0]
    states2d = states.reshape(-1, STATE_DIM).astype(jnp.float32)   # (N, S)
    qs2d = agent_qs.reshape(-1, N_AGENTS).astype(jnp.float32)      # (N, A)
    n_rows = states2d.shape[0]

    w_first, b_first, w_second, b_second = pack_params(params)

    # Biggest row tile that makes sense: whole problem in one grid step for
    # small N (here N=16 -> grid=(1,)), up to MAX_ROW_TILE-row steps otherwise.
    row_tile = min(_round_up(n_rows, 8), MAX_ROW_TILE)
    n_rows_pad = _round_up(n_rows, row_tile)
    if n_rows_pad != n_rows:
        pad = n_rows_pad - n_rows
        states2d = jnp.pad(states2d, ((0, pad), (0, 0)))
        qs2d = jnp.pad(qs2d, ((0, pad), (0, 0)))
    num_tiles = n_rows_pad // row_tile

    def const_spec(arr):
        # constant index_map -> fetched once, resident across all grid steps
        return pl.BlockSpec(arr.shape, lambda i: (0, 0))

    out = pl.pallas_call(
        qmixer_kernel,
        out_shape=jax.ShapeDtypeStruct((num_tiles, row_tile), jnp.float32),
        grid=(num_tiles,),
        in_specs=[
            pl.BlockSpec((row_tile, STATE_DIM), lambda i: (i, 0)),
            pl.BlockSpec((row_tile, N_AGENTS), lambda i: (i, 0)),
            const_spec(w_first),
            const_spec(b_first),
            const_spec(w_second),
            const_spec(b_second),
        ],
        out_specs=pl.BlockSpec((1, row_tile), lambda i: (i, 0)),
        compiler_params=pltpu.CompilerParams(dimension_semantics=("parallel",)),
    )(states2d, qs2d, w_first, b_first, w_second, b_second)

    q_tot = out.reshape(-1)[:n_rows]
    return q_tot.reshape(bs, -1, 1)


def make_params(key):
    """Deterministic synthetic weights. All Linear weights stored as (in, out)."""
    ks = jax.random.split(key, 14)
    scale = 0.1

    def w(k, shape):
        return (scale * jax.random.normal(k, shape)).astype(jnp.float32)

    wh1 = w(ks[0], (STATE_DIM, HYPERNET_EMBED));            bh1 = w(ks[1], (1, HYPERNET_EMBED))
    wh2 = w(ks[2], (HYPERNET_EMBED, EMBED_DIM * N_AGENTS)); bh2 = w(ks[3], (1, EMBED_DIM * N_AGENTS))
    wb1 = w(ks[4], (STATE_DIM, EMBED_DIM));                 bb1 = w(ks[5], (1, EMBED_DIM))
    wf1 = w(ks[6], (STATE_DIM, HYPERNET_EMBED));            bf1 = w(ks[7], (1, HYPERNET_EMBED))
    wf2 = w(ks[8], (HYPERNET_EMBED, EMBED_DIM));            bf2 = w(ks[9], (1, EMBED_DIM))
    wv1 = w(ks[10], (STATE_DIM, EMBED_DIM));                bv1 = w(ks[11], (1, EMBED_DIM))
    wv2 = w(ks[12], (EMBED_DIM, 1));                        bv2 = w(ks[13], (1, 1))
    return (wh1, bh1, wh2, bh2, wb1, bb1, wf1, bf1, wf2, bf2, wv1, bv1, wv2, bv2)


def qmixer_reference(agent_qs, states, params):
    """Pure-JAX reference mirroring the PyTorch forward exactly (unfused weights)."""
    (wh1, bh1, wh2, bh2, wb1, bb1, wf1, bf1, wf2, bf2, wv1, bv1, wv2, bv2) = params
    bs = agent_qs.shape[0]
    s = states.reshape(-1, STATE_DIM).astype(jnp.float32)
    q = agent_qs.reshape(-1, 1, N_AGENTS).astype(jnp.float32)

    w1 = jnp.abs(jnp.maximum(s @ wh1 + bh1, 0.0) @ wh2 + bh2)
    b1 = (s @ wb1 + bb1).reshape(-1, 1, EMBED_DIM)
    w1 = w1.reshape(-1, N_AGENTS, EMBED_DIM)
    hidden = jax.nn.elu(jnp.einsum("bij,bjk->bik", q, w1) + b1)

    w_final = jnp.abs(jnp.maximum(s @ wf1 + bf1, 0.0) @ wf2 + bf2).reshape(-1, EMBED_DIM, 1)
    v = (jnp.maximum(s @ wv1 + bv1, 0.0) @ wv2 + bv2).reshape(-1, 1, 1)
    y = jnp.einsum("bij,bjk->bik", hidden, w_final) + v
    return y.reshape(bs, -1, 1)


if __name__ == "__main__":
    key = jax.random.PRNGKey(0)
    k_p, k_q, k_s = jax.random.split(key, 3)

    params = make_params(k_p)
    agent_qs = jax.random.normal(k_q, (BS, T, N_AGENTS), dtype=jnp.float32)
    states = jax.random.normal(k_s, (BS, T, STATE_DIM), dtype=jnp.float32)

    q_tot = qmixer_forward(agent_qs, states, params)
    q_tot = jax.block_until_ready(q_tot)

    q_ref = qmixer_reference(agent_qs, states, params)
    assert q_tot.shape == (BS, T, 1)
    assert jnp.allclose(q_tot, q_ref, atol=1e-4, rtol=1e-4), "mismatch vs reference"

    print("KERNEL_OK")
</pallas_src>

<mosaic_0001>
module attributes {stable_mosaic.version = 11 : i64} {
  func.func @qmixer_kernel(%arg0: i32, %arg1: memref<16x32xf32, #tpu.memory_space<vmem>>, %arg2: memref<16x4xf32, #tpu.memory_space<vmem>>, %arg3: memref<32x256xf32, #tpu.memory_space<vmem>>, %arg4: memref<1x256xf32, #tpu.memory_space<vmem>>, %arg5: memref<256x256xf32, #tpu.memory_space<vmem>>, %arg6: memref<1x256xf32, #tpu.memory_space<vmem>>, %arg7: memref<1x16xf32, #tpu.memory_space<vmem>>) attributes {dimension_semantics = [#tpu.dimension_semantics<parallel>], iteration_bounds = array<i64: 1>, scalar_prefetch = 0 : i64, scratch_operands = 0 : i64, tpu.core_type = #tpu.core_type<tc>, window_params = [{transform_indices = @transform_0, window_bounds = array<i64: 16, 32>}, {transform_indices = @transform_1, window_bounds = array<i64: 16, 4>}, {pipeline_mode = #tpu.pipeline_mode<synchronous>, transform_indices = @transform_2, window_bounds = array<i64: 32, 256>}, {pipeline_mode = #tpu.pipeline_mode<synchronous>, transform_indices = @transform_3, window_bounds = array<i64: 1, 256>}, {pipeline_mode = #tpu.pipeline_mode<synchronous>, transform_indices = @transform_4, window_bounds = array<i64: 256, 256>}, {pipeline_mode = #tpu.pipeline_mode<synchronous>, transform_indices = @transform_5, window_bounds = array<i64: 1, 256>}, {transform_indices = @transform_6, window_bounds = array<i64: 1, 16>}]} {
    %c0 = arith.constant 0 : index
    %c0_0 = arith.constant 0 : index
    %0 = vector.load %arg1[%c0, %c0_0] : memref<16x32xf32, #tpu.memory_space<vmem>>, vector<16x32xf32>
    %c0_1 = arith.constant 0 : index
    %c0_2 = arith.constant 0 : index
    %1 = vector.load %arg2[%c0_1, %c0_2] : memref<16x4xf32, #tpu.memory_space<vmem>>, vector<16x4xf32>
    %c0_3 = arith.constant 0 : index
    %c0_4 = arith.constant 0 : index
    %2 = vector.load %arg3[%c0_3, %c0_4] : memref<32x256xf32, #tpu.memory_space<vmem>>, vector<32x256xf32>
    %cst = arith.constant dense<0.000000e+00> : vector<16x256xf32>
    %3 = tpu.matmul %0, %2, %cst {dimension_numbers = #tpu.dot_dimension_numbers<[1], [0], [0], [1], [0, 0, 1, 1], [], []>} : vector<16x32xf32>, vector<32x256xf32>, vector<16x256xf32> -> vector<16x256xf32>
    %c0_5 = arith.constant 0 : index
    %c0_6 = arith.constant 0 : index
    %4 = vector.load %arg4[%c0_5, %c0_6] : memref<1x256xf32, #tpu.memory_space<vmem>>, vector<1x256xf32>
    %5 = vector.broadcast %4 : vector<1x256xf32> to vector<16x256xf32>
    %6 = arith.addf %3, %5 : vector<16x256xf32>
    %7 = vector.extract_strided_slice %6 {offsets = [0, 160], sizes = [16, 32], strides = [1, 1]} : vector<16x256xf32> to vector<16x32xf32>
    %cst_7 = arith.constant 0.000000e+00 : f32
    %8 = vector.broadcast %cst_7 : f32 to vector<16x256xf32>
    %9 = arith.maximumf %6, %8 : vector<16x256xf32>
    %c0_8 = arith.constant 0 : index
    %c0_9 = arith.constant 0 : index
    %10 = vector.load %arg5[%c0_8, %c0_9] : memref<256x256xf32, #tpu.memory_space<vmem>>, vector<256x256xf32>
    %cst_10 = arith.constant dense<0.000000e+00> : vector<16x256xf32>
    %11 = tpu.matmul %9, %10, %cst_10 {dimension_numbers = #tpu.dot_dimension_numbers<[1], [0], [0], [1], [0, 0, 1, 1], [], []>} : vector<16x256xf32>, vector<256x256xf32>, vector<16x256xf32> -> vector<16x256xf32>
    %c0_11 = arith.constant 0 : index
    %c0_12 = arith.constant 0 : index
    %12 = vector.load %arg6[%c0_11, %c0_12] : memref<1x256xf32, #tpu.memory_space<vmem>>, vector<1x256xf32>
    %13 = vector.broadcast %12 : vector<1x256xf32> to vector<16x256xf32>
    %14 = arith.addf %11, %13 : vector<16x256xf32>
    %15 = vector.extract_strided_slice %14 {offsets = [0, 0], sizes = [16, 128], strides = [1, 1]} : vector<16x256xf32> to vector<16x128xf32>
    %16 = math.absf %15 : vector<16x128xf32>
    %17 = vector.extract_strided_slice %14 {offsets = [0, 128], sizes = [16, 32], strides = [1, 1]} : vector<16x256xf32> to vector<16x32xf32>
    %18 = math.absf %17 : vector<16x32xf32>
    %19 = vector.extract_strided_slice %14 {offsets = [0, 160], sizes = [16, 1], strides = [1, 1]} : vector<16x256xf32> to vector<16x1xf32>
    %20 = vector.extract_strided_slice %1 {offsets = [0, 0], sizes = [16, 1], strides = [1, 1]} : vector<16x4xf32> to vector<16x1xf32>
    %21 = vector.extract_strided_slice %16 {offsets = [0, 0], sizes = [16, 32], strides = [1, 1]} : vector<16x128xf32> to vector<16x32xf32>
    %22 = vector.broadcast %20 : vector<16x1xf32> to vector<16x32xf32>
    %23 = arith.mulf %22, %21 : vector<16x32xf32>
    %24 = arith.addf %7, %23 : vector<16x32xf32>
    %25 = vector.extract_strided_slice %1 {offsets = [0, 1], sizes = [16, 1], strides = [1, 1]} : vector<16x4xf32> to vector<16x1xf32>
    %26 = vector.extract_strided_slice %16 {offsets = [0, 32], sizes = [16, 32], strides = [1, 1]} : vector<16x128xf32> to vector<16x32xf32>
    %27 = vector.broadcast %25 : vector<16x1xf32> to vector<16x32xf32>
    %28 = arith.mulf %27, %26 : vector<16x32xf32>
    %29 = arith.addf %24, %28 : vector<16x32xf32>
    %30 = vector.extract_strided_slice %1 {offsets = [0, 2], sizes = [16, 1], strides = [1, 1]} : vector<16x4xf32> to vector<16x1xf32>
    %31 = vector.extract_strided_slice %16 {offsets = [0, 64], sizes = [16, 32], strides = [1, 1]} : vector<16x128xf32> to vector<16x32xf32>
    %32 = vector.broadcast %30 : vector<16x1xf32> to vector<16x32xf32>
    %33 = arith.mulf %32, %31 : vector<16x32xf32>
    %34 = arith.addf %29, %33 : vector<16x32xf32>
    %35 = vector.extract_strided_slice %1 {offsets = [0, 3], sizes = [16, 1], strides = [1, 1]} : vector<16x4xf32> to vector<16x1xf32>
    %36 = vector.extract_strided_slice %16 {offsets = [0, 96], sizes = [16, 32], strides = [1, 1]} : vector<16x128xf32> to vector<16x32xf32>
    %37 = vector.broadcast %35 : vector<16x1xf32> to vector<16x32xf32>
    %38 = arith.mulf %37, %36 : vector<16x32xf32>
    %39 = arith.addf %34, %38 : vector<16x32xf32>
    %cst_13 = arith.constant 0.000000e+00 : f32
    %40 = vector.broadcast %cst_13 : f32 to vector<16x32xf32>
    %41 = arith.cmpf ogt, %39, %40 : vector<16x32xf32>
    %cst_14 = arith.constant 0.000000e+00 : f32
    %42 = vector.broadcast %cst_14 : f32 to vector<16x32xf32>
    %43 = arith.minimumf %39, %42 : vector<16x32xf32>
    %44 = math.exp %43 : vector<16x32xf32>
    %cst_15 = arith.constant 1.000000e+00 : f32
    %45 = vector.broadcast %cst_15 : f32 to vector<16x32xf32>
    %46 = arith.subf %44, %45 : vector<16x32xf32>
    %47 = arith.select %41, %39, %46 : vector<16x32xi1>, vector<16x32xf32>
    %48 = arith.mulf %47, %18 : vector<16x32xf32>
    %cst_16 = arith.constant dense<0.000000e+00> : vector<16xf32>
    %49 = vector.multi_reduction <add>, %48, %cst_16 [1] : vector<16x32xf32> to vector<16xf32>
    %50 = vector.shape_cast %49 : vector<16xf32> to vector<16x1xf32>
    %51 = arith.addf %50, %19 : vector<16x1xf32>
    %52 = tpu.transpose %51, [1, 0] : vector<16x1xf32> -> vector<1x16xf32>
    %c0_17 = arith.constant 0 : index
    %c0_18 = arith.constant 0 : index
    %53 = vector.load %arg7[%c0_17, %c0_18] : memref<1x16xf32, #tpu.memory_space<vmem>>, vector<1x16xf32>
    tpu.vector_store %arg7[%c0_17, %c0_18], %52 {strides = array<i32>} : memref<1x16xf32, #tpu.memory_space<vmem>>, vector<1x16xf32>,
    return
  }
  func.func @transform_0(%arg0: i32) -> (i32, i32) {
    %c0_i32 = arith.constant 0 : i32
    %c0_i32_0 = arith.constant 0 : i32
    return %arg0, %c0_i32 : i32, i32
  }
  func.func @transform_1(%arg0: i32) -> (i32, i32) {
    %c0_i32 = arith.constant 0 : i32
    %c0_i32_0 = arith.constant 0 : i32
    return %arg0, %c0_i32 : i32, i32
  }
  func.func @transform_2(%arg0: i32) -> (i32, i32) {
    %c0_i32 = arith.constant 0 : i32
    %c0_i32_0 = arith.constant 0 : i32
    %c0_i32_1 = arith.constant 0 : i32
    return %c0_i32, %c0_i32_0 : i32, i32
  }
  func.func @transform_3(%arg0: i32) -> (i32, i32) {
    %c0_i32 = arith.constant 0 : i32
    %c0_i32_0 = arith.constant 0 : i32
    %c0_i32_1 = arith.constant 0 : i32
    return %c0_i32, %c0_i32_0 : i32, i32
  }
  func.func @transform_4(%arg0: i32) -> (i32, i32) {
    %c0_i32 = arith.constant 0 : i32
    %c0_i32_0 = arith.constant 0 : i32
    %c0_i32_1 = arith.constant 0 : i32
    return %c0_i32, %c0_i32_0 : i32, i32
  }
  func.func @transform_5(%arg0: i32) -> (i32, i32) {
    %c0_i32 = arith.constant 0 : i32
    %c0_i32_0 = arith.constant 0 : i32
    %c0_i32_1 = arith.constant 0 : i32
    return %c0_i32, %c0_i32_0 : i32, i32
  }
  func.func @transform_6(%arg0: i32) -> (i32, i32) {
    %c0_i32 = arith.constant 0 : i32
    %c0_i32_0 = arith.constant 0 : i32
    return %arg0, %c0_i32 : i32, i32
  }
}

</mosaic_0001>

<bundles_post_ra>
// kernel: tpu_custom_call.1
= control target key start
LH: loop header
LB: loop body
LE: loop exit
PB: predicated region body
PF: predicated region fallthrough
CT: control target
= control target key end

     0   :  { %11 = vsyncpa [#allocation3], 0  ;;  %s673_s0 = inlined_call_operand.vmem [shape: f32[16,32], index: 0, kind: input, shape index: {}]   ;;  %s674_s1 = inlined_call_operand.vmem [shape: f32[16,4], index: 1, kind: input, shape index: {}]   ;;  %s675_s2 = inlined_call_operand.hbm [shape: f32[32,256], index: 2, kind: input, shape index: {}]   ;;  %s676_s3 = inlined_call_operand.vmem [shape: f32[1,256], index: 3, kind: input, shape index: {}]   ;;  %s677_s4 = inlined_call_operand.hbm [shape: f32[256,256], index: 4, kind: input, shape index: {}]   ;;  %s678_s5 = inlined_call_operand.vmem [shape: f32[1,256], index: 5, kind: input, shape index: {}]   ;;  %s679_s6 = inlined_call_operand.hbm [shape: f32[1,16], index: 6, kind: output, shape index: {}]  }
   0x1   :  { %12 = vsyncpa [#allocation6], 0 }
   0x2   :  { %13 = vsyncpa [#allocation4], 0  ;;  %s585_s21 = smov [#allocation2]  }
   0x3   :  { %s23_s22 = sshll.u32 %s585_s21, 4  ;;  %s24_s22 = int_to_ptr.vmem [resolvable:$true] %s23_s22 }
   0x4   :  { %s527_s23 = scalar_lea.vmem %s24_s22, 1024  ;;  %p532_p1 = scmp.lt.s32.totalorder %s24_s22, %s24_s22 }
   0x5   :  { %p528_p0 = scmp.ne.s32.totalorder %s24_s22, %s527_s23  ;;  %p533_p2 = scmp.lt.s32.totalorder %s527_s23, %s527_s23 }
   0x7   :  { %p534_p3 = por %p533_p2, %p532_p1 }
   0x9   :  { %p535_p4 = pnand %p534_p3, %p528_p0 }
   0xb   :  { %538 = shalt.err (!%p535_p4)
}
   0xc   :  { %s586_s24 = smov 256   ;;  %s587_s25 = smov 16  }
   0xd   :  { %29 = dma.hbm_to_vmem [thread:$0]  %s675_s2, 1024, %s24_s22, [#allocation3], %s586_s24, %s586_s24, %s587_s25  }
   0xe   :  { %s588_s28 = smov [#allocation5]  }
   0xf   :  { %s37_s29 = sshll.u32 %s588_s28, 4  ;;  %s38_s29 = int_to_ptr.vmem [resolvable:$true] %s37_s29 }
  0x10   :  { %s547_s30 = scalar_lea.vmem %s38_s29, 8192  ;;  %p552_p6 = scmp.lt.s32.totalorder %s38_s29, %s38_s29 }
  0x11   :  { %p548_p5 = scmp.ne.s32.totalorder %s38_s29, %s547_s30  ;;  %p553_p7 = scmp.lt.s32.totalorder %s547_s30, %s547_s30 }
  0x13   :  { %p554_p8 = por %p553_p7, %p552_p6 }
  0x15   :  { %p555_p9 = pnand %p554_p8, %p548_p5 }
  0x17   :  { %558 = shalt.err (!%p555_p9)
}
  0x18   :  { %43 = dma.hbm_to_vmem [thread:$0]  %s677_s4, 8192, %s38_s29, [#allocation6], %s586_s24, %s586_s24, %s587_s25  }
  0x19   :  { %579 = dma.done.wait [#allocation3], 1024  }
  0x1a   :  { %580 = vsyncadd [#allocation3], 4294966272 }
  0x1b   :  { %581 = dma.done.wait [#allocation6], 8192  }
  0x1c   :  { %582 = vsyncadd [#allocation6], 4294959104  ;;  %v589_v0 = vmov 0.0   ;;  %v63_v1 = vld [vmem:[#allocation2 + $0x38] sm:$0xff]  ;;  %v62_v2 = vld [vmem:[#allocation2 + $0x30] sm:$0xff]  ;;  %vm76_vm0 = vcmask 261120  }
  0x1d   :  { %147 = vmatprep.mubr.f32.mxu0 %v589_v0  ;;  %v61_v3 = vld [vmem:[#allocation2 + $0x28] sm:$0xff]  ;;  %107 = vmatprep.subr.mxu0 %v63_v1  ;;  %v60_v4 = vld [vmem:[#allocation2 + $0x20] sm:$0xff]  ;;  %v59_v5 = vld [vmem:[#allocation2 + $0x18] sm:$0xff]  ;;  %s594_s16 = smov 96   ;;  %s595_s17 = smov 32   ;;  %vm473_vm3 = vcmask 122880  }
  0x1e   :  { %108 = vmatpush1.msra.mxu0 %v62_v2  ;;  %v58_v6 = vld [vmem:[#allocation2 + $0x10] sm:$0xff]  ;;  %v195_v7 = vld [vmem:[#allocation5 + $0xf8] sm:$0xff]  ;;  %v57_v9 = vld [vmem:[#allocation2 + $0x8] sm:$0xff]  ;;  %s597_s18 = smov [#allocation7]  }
  0x1f   :  { %109 = vmatprep.subr.mxu0 %v61_v3  ;;  %v194_v8 = vld [vmem:[#allocation5 + $0xf0] sm:$0xff]  ;;  %240 = vmatprep.subr.mxu1 %v195_v7  ;;  %v193_v10 = vld [vmem:[#allocation5 + $0xe8] sm:$0xff]  ;;  %v192_v11 = vld [vmem:[#allocation5 + $0xe0] sm:$0xff]  ;;  %s481_s19 = sshll.u32 %s597_s18, 4  ;;  %s482_s19 = int_to_ptr.vmem [resolvable:$true] %s481_s19 }
  0x20   :  { %110 = vmatpush1.msra.mxu0 %v60_v4  ;;  %v56_v12 = vld [vmem:[#allocation2] sm:$0xff]  ;;  %241 = vmatpush1.msra.mxu1 %v194_v8  ;;  %v191_v13 = vld [vmem:[#allocation5 + $0xd8] sm:$0xff]  ;;  %v190_v15 = vld [vmem:[#allocation5 + $0xd0] sm:$0xff]  ;;  %s559_s20 = scalar_lea.vmem %s482_s19, 16  ;;  %s563_s21 = scalar_lea.vmem %s482_s19, 32 }
  0x21   :  { %111 = vmatprep.subr.mxu0 %v59_v5  ;;  %v52_v14 = vld [vmem:[%s673_s0] sm:$0xff]  ;;  %242 = vmatprep.subr.mxu1 %v193_v10  ;;  %v189_v16 = vld [vmem:[#allocation5 + $0xc8] sm:$0xff]  ;;  %v187_v18 = vld [vmem:[#allocation5 + $0xb8] sm:$0xff]  ;;  %p560_p10 = scmp.ne.s32.totalorder %s482_s19, %s559_s20  ;;  %p564_p11 = scmp.lt.s32.totalorder %s482_s19, %s482_s19 }
  0x22   :  { %112 = vmatpush1.msra.mxu0 %v58_v6  ;;  %243 = vmatpush1.msra.mxu1 %v192_v11  ;;  %v188_v17 = vld [vmem:[#allocation5 + $0xc0] sm:$0xff]  ;;  %v53_v19 = vld [vmem:[%s673_s0 + $0x8] sm:$0xff]  ;;  %v186_v20 = vld [vmem:[#allocation5 + $0xb0] sm:$0xff]  ;;  %p565_p12 = scmp.lt.s32.totalorder %s563_s21, %s559_s20 }
  0x23   :  { %113 = vmatprep.subr.mxu0 %v57_v9  ;;  %244 = vmatprep.subr.mxu1 %v191_v13  ;;  %v185_v21 = vld [vmem:[#allocation5 + $0xa8] sm:$0xff]  ;;  %v184_v22 = vld [vmem:[#allocation5 + $0xa0] sm:$0xff]  ;;  %v183_v23 = vld [vmem:[#allocation5 + $0x98] sm:$0xff]  ;;  %v591_v13 = vmov 0  }
  0x24   :  { %114 = vmatpush1.msra.mxu0 %v56_v12  ;;  %245 = vmatpush1.msra.mxu1 %v190_v15  ;;  %v182_v24 = vld [vmem:[#allocation5 + $0x90] sm:$0xff]  ;;  %v181_v25 = vld [vmem:[#allocation5 + $0x88] sm:$0xff]  ;;  %v180_v26 = vld [vmem:[#allocation5 + $0x80] sm:$0xff]  ;;  %v590_v12 = vmov 2   ;;  %v592_v15 = vmov 3   ;;  %p566_p13 = por %p565_p12, %p564_p11 }
  0x25   :  { %491 = vmatmul.mubr.msk.f32.vlgmr.msra.gmra.mxu0 %vm76_vm0, %v52_v14  ;;  %246 = vmatprep.subr.mxu1 %v189_v16  ;;  %v179_v27 = vld [vmem:[#allocation5 + $0x78] sm:$0xff]  ;;  %v178_v28 = vld [vmem:[#allocation5 + $0x70] sm:$0xff]  ;;  %v177_v29 = vld [vmem:[#allocation5 + $0x68] sm:$0xff]  ;;  %v593_v16 = vmov 1  }
  0x26   :  { %153 = vmatprep.mubr.f32.mxu0 %v589_v0  ;;  %247 = vmatpush1.msra.mxu1 %v188_v17  ;;  %v176_v30 = vld [vmem:[#allocation5 + $0x60] sm:$0xff]  ;;  %v175_v31 = vld [vmem:[#allocation5 + $0x58] sm:$0xff]  ;;  %v174_v32 = vld [vmem:[#allocation5 + $0x50] sm:$0xff]  ;;  %v66_v17 = vlaneseq  ;;  %p567_p0 = pnand %p566_p13, %p560_p10 }
  0x27   :  { %248 = vmatprep.subr.mxu1 %v187_v18  ;;  %v173_v33 = vld [vmem:[#allocation5 + $0x48] sm:$0xff]  ;;  %v172_v34 = vld [vmem:[#allocation5 + $0x40] sm:$0xff]  ;;  %v171_v35 = vld [vmem:[#allocation5 + $0x38] sm:$0xff]  ;;  %509 = vset.pattern.permute.xlu1 %v590_v12 }
  0x28   :  { %249 = vmatpush1.msra.mxu1 %v186_v20  ;;  %v170_v36 = vld [vmem:[#allocation5 + $0x30] sm:$0xff]  ;;  %v169_v37 = vld [vmem:[#allocation5 + $0x28] sm:$0xff]  ;;  %v168_v38 = vld [vmem:[#allocation5 + $0x20] sm:$0xff]  ;;  %508 = vset.pattern.permute.xlu0 %v591_v13  ;;  %v67_v18 = vshrl.u32 %v66_v17, 7 }
  0x29   :  { %492 = vmatmul.mubr.msk.f32.gmra.mxu0 %vm76_vm0, %v53_v19  ;;  %250 = vmatprep.subr.mxu1 %v185_v21  ;;  %v167_v39 = vld [vmem:[#allocation5 + $0x18] sm:$0xff]  ;;  %v166_v40 = vld [vmem:[#allocation5 + $0x10] sm:$0xff]  ;;  %v165_v41 = vld [vmem:[#allocation5 + $0x8] sm:$0xff] }
  0x2a   :  { %251 = vmatpush1.msra.mxu1 %v184_v22  ;;  %v164_v42 = vld [vmem:[#allocation5] sm:$0xff]  ;;  %v227_v43 = vld [vmem:[#allocation5 + $0x1f8] sm:$0xff]  ;;  %v226_v44 = vld [vmem:[#allocation5 + $0x1f0] sm:$0xff]  ;;  %v68_v19 = vsub.s32 0, %v67_v18  ;;  %v72_v21 = vsub.s32 1, %v67_v18 }
  0x2b   :  { %252 = vmatprep.subr.mxu1 %v183_v23  ;;  %v225_v45 = vld [vmem:[#allocation5 + $0x1e8] sm:$0xff]  ;;  %v224_v46 = vld [vmem:[#allocation5 + $0x1e0] sm:$0xff]  ;;  %v223_v47 = vld [vmem:[#allocation5 + $0x1d8] sm:$0xff] }
  0x2c   :  { %253 = vmatpush1.msra.mxu1 %v182_v24  ;;  %v222_v48 = vld [vmem:[#allocation5 + $0x1d0] sm:$0xff]  ;;  %v221_v49 = vld [vmem:[#allocation5 + $0x1c8] sm:$0xff]  ;;  %v220_v50 = vld [vmem:[#allocation5 + $0x1c0] sm:$0xff] }
  0x2d   :  { %254 = vmatprep.subr.mxu1 %v181_v25  ;;  %v219_v51 = vld [vmem:[#allocation5 + $0x1b8] sm:$0xff]  ;;  %v218_v52 = vld [vmem:[#allocation5 + $0x1b0] sm:$0xff]  ;;  %v217_v53 = vld [vmem:[#allocation5 + $0x1a8] sm:$0xff] }
  0x2e   :  { %255 = vmatpush1.msra.mxu1 %v180_v26  ;;  %v216_v54 = vld [vmem:[#allocation5 + $0x1a0] sm:$0xff]  ;;  %v215_v55 = vld [vmem:[#allocation5 + $0x198] sm:$0xff]  ;;  %v214_v56 = vld [vmem:[#allocation5 + $0x190] sm:$0xff] }
  0x2f   :  { %256 = vmatprep.subr.mxu1 %v179_v27  ;;  %v213_v57 = vld [vmem:[#allocation5 + $0x188] sm:$0xff]  ;;  %v212_v58 = vld [vmem:[#allocation5 + $0x180] sm:$0xff]  ;;  %v211_v59 = vld [vmem:[#allocation5 + $0x178] sm:$0xff] }
  0x30   :  { %257 = vmatpush1.msra.mxu1 %v178_v28  ;;  %v210_v60 = vld [vmem:[#allocation5 + $0x170] sm:$0xff]  ;;  %v209_v61 = vld [vmem:[#allocation5 + $0x168] sm:$0xff]  ;;  %v208_v62 = vld [vmem:[#allocation5 + $0x160] sm:$0xff] }
  0x31   :  { %258 = vmatprep.subr.mxu1 %v177_v29  ;;  %v207_v63 = vld [vmem:[#allocation5 + $0x158] sm:$0xff]  ;;  %v206_v0 = vld [vmem:[#allocation5 + $0x150] sm:$0xff]  ;;  %v205_v1 = vld [vmem:[#allocation5 + $0x148] sm:$0xff] }
  0x32   :  { %259 = vmatpush1.msra.mxu1 %v176_v30  ;;  %v204_v2 = vld [vmem:[#allocation5 + $0x140] sm:$0xff]  ;;  %v203_v3 = vld [vmem:[#allocation5 + $0x138] sm:$0xff]  ;;  %v202_v4 = vld [vmem:[#allocation5 + $0x130] sm:$0xff] }
  0x33   :  { %260 = vmatprep.subr.mxu1 %v175_v31  ;;  %v201_v5 = vld [vmem:[#allocation5 + $0x128] sm:$0xff]  ;;  %v200_v6 = vld [vmem:[#allocation5 + $0x120] sm:$0xff]  ;;  %v199_v7 = vld [vmem:[#allocation5 + $0x118] sm:$0xff] }
  0x34   :  { %261 = vmatpush1.msra.mxu1 %v174_v32  ;;  %v198_v8 = vld [vmem:[#allocation5 + $0x110] sm:$0xff]  ;;  %v197_v9 = vld [vmem:[#allocation5 + $0x108] sm:$0xff]  ;;  %v196_v10 = vld [vmem:[#allocation5 + $0x100] sm:$0xff] }
  0x35   :  { %262 = vmatprep.subr.mxu1 %v173_v33  ;;  %v54_v11 = vld [vmem:[%s674_s1] sm:$0xff]  ;;  %v55_v14 = vld [vmem:[%s674_s1 + $0x8] sm:$0xff] }
  0x36   :  { %263 = vmatpush1.msra.mxu1 %v172_v34  ;;  %356 = vperm.xlu1 %509, %v54_v11   ;;  %v64_v20 = vld [vmem:[%s676_s3] sm:$0x3] }
  0x37   :  { %264 = vmatprep.subr.mxu1 %v171_v35  ;;  %323 = vperm.xlu0 %508, %v54_v11   ;;  %v69_v22 = vrot.slane %v64_v20, %v68_v19  ;;  %v73_v23 = vrot.slane %v64_v20, %v72_v21 }
  0x38   :  { %265 = vmatpush1.msra.mxu1 %v170_v36  ;;  %v228_v36 = vld [vmem:[%s678_s5] sm:$0x3]  ;;  %s596_s5 = smov 64  }
  0x39   :  { %266 = vmatprep.subr.mxu1 %v169_v37 }
  0x3a   :  { %267 = vmatpush1.msra.mxu1 %v168_v38  ;;  %360 = vperm.xlu1 %509, %v55_v14   ;;  %v233_v38 = vrot.slane %v228_v36, %v68_v19 }
  0x3b   :  { %268 = vmatprep.subr.mxu1 %v167_v39  ;;  %328 = vperm.xlu0 %508, %v55_v14  }
  0x3c   :  { %269 = vmatpush1.msra.mxu1 %v166_v40 }
  0x3d   :  { %270 = vmatprep.subr.mxu1 %v165_v41 }
  0x3e   :  { %271 = vmatpush1.msra.mxu1 %v164_v42  ;;  %511 = vset.pattern.permute.xlu1 %v592_v15 }
  0x3f   :  { %272 = vmatprep.subr.mxu1 %v227_v43  ;;  %510 = vset.pattern.permute.xlu0 %v592_v15 }
  0x40   :  { %273 = vmatpush2.msra.mxu1 %v226_v44  ;;  %380 = vperm.xlu1 %511, %v55_v14  }
  0x41   :  { %274 = vmatprep.subr.mxu1 %v225_v45  ;;  %376 = vperm.xlu0 %510, %v54_v11  }
  0x42   :  { %275 = vmatpush2.msra.mxu1 %v224_v46 }
  0x43   :  { %276 = vmatprep.subr.mxu1 %v223_v47  ;;  %v237_v47 = vrot.slane %v228_v36, %v72_v21 }
  0x44   :  { %277 = vmatpush2.msra.mxu1 %v222_v48  ;;  %512 = vset.pattern.permute.xlu1 %v593_v16 }
  0x45   :  { %278 = vmatprep.subr.mxu1 %v221_v49  ;;  %513 = vset.pattern.permute.xlu0 %v593_v16 }
  0x46   :  { %279 = vmatpush2.msra.mxu1 %v220_v50  ;;  %344 = vperm.xlu1 %512, %v54_v11  }
  0x47   :  { %280 = vmatprep.subr.mxu1 %v219_v51  ;;  %348 = vperm.xlu0 %513, %v55_v14  }
  0x48   :  { %281 = vmatpush2.msra.mxu1 %v218_v52 }
  0x49   :  { %282 = vmatprep.subr.mxu1 %v217_v53 }
  0x4a   :  { %283 = vmatpush2.msra.mxu1 %v216_v54 }
  0x4b   :  { %284 = vmatprep.subr.mxu1 %v215_v55 }
  0x4c   :  { %285 = vmatpush2.msra.mxu1 %v214_v56 }
  0x4d   :  { %286 = vmatprep.subr.mxu1 %v213_v57 }
  0x4e   :  { %287 = vmatpush2.msra.mxu1 %v212_v58 }
  0x4f   :  { %288 = vmatprep.subr.mxu1 %v211_v59 }
  0x50   :  { %289 = vmatpush2.msra.mxu1 %v210_v60 }
  0x51   :  { %290 = vmatprep.subr.mxu1 %v209_v61 }
  0x52   :  { %291 = vmatpush2.msra.mxu1 %v208_v62 }
  0x53   :  { %292 = vmatprep.subr.mxu1 %v207_v63 }
  0x54   :  { %293 = vmatpush2.msra.mxu1 %v206_v0 }
  0x55   :  { %294 = vmatprep.subr.mxu1 %v205_v1 }
  0x56   :  { %295 = vmatpush2.msra.mxu1 %v204_v2 }
  0x57   :  { %296 = vmatprep.subr.mxu1 %v203_v3 }
  0x58   :  { %297 = vmatpush2.msra.mxu1 %v202_v4 }
  0x59   :  { %298 = vmatprep.subr.mxu1 %v201_v5 }
  0x5a   :  { %299 = vmatpush2.msra.mxu1 %v200_v6 }
  0x5b   :  { %300 = vmatprep.subr.mxu1 %v199_v7 }
  0x5c   :  { %301 = vmatpush2.msra.mxu1 %v198_v8 }
  0x5d   :  { %302 = vmatprep.subr.mxu1 %v197_v9 }
  0x5e   :  { %303 = vmatpush2.msra.mxu1 %v196_v10 }
  0xb1   :  { %v357_v45 = vpop.permute.xlu1 %356 }
  0xb2   :  { %v324_v37 = vpop.permute.xlu0 %323 }
  0xb5   :  { %v361_v55 = vpop.permute.xlu1 %360 }
  0xb6   :  { %v329_v40 = vpop.permute.xlu0 %328 }
  0xbb   :  { %v381_v59 = vpop.permute.xlu1 %380 }
  0xbc   :  { %v377_v50 = vpop.permute.xlu0 %376 }
  0xc1   :  { %v345_v63 = vpop.permute.xlu1 %344 }
  0xc2   :  { %v349_v0 = vpop.permute.xlu0 %348 }
  0xe5   :  { %v149_v24 = vpop.f32.mrf.mxu0 }
  0xe6   :  { %v150_v25 = vadd.f32 %v149_v24, %v69_v22 }
  0xe7   :  { %v151_v26 = vpop.f32.mrf.mxu0 }
  0xe8   :  { %v152_v27 = vadd.f32 %v151_v26, %v73_v23  ;;  %v160_v30 = vmax.f32 %v150_v25, 0.0 }
  0xe9   :  { %v155_v28 = vpop.f32.mrf.mxu0 }
  0xea   :  { %v161_v29 = vmax.f32 %v152_v27, 0.0  ;;  %v156_v31 = vadd.f32 %v155_v28, %v69_v22 }
  0xeb   :  { %v157_v32 = vpop.f32.mrf.mxu0 }
  0xec   :  { %v158_v33 = vadd.f32 %v157_v32, %v73_v23  ;;  %304 = vmatprep.mubr.f32.mxu1 %v161_v29  ;;  %v162_v35 = vmax.f32 %v156_v31, 0.0 }
  0xed   :  { %305 = vmatmul.mubr.f32.vlgmr.msra.gmra.mxu1 %v160_v30 }
  0xee   :  { %v163_v34 = vmax.f32 %v158_v33, 0.0 }
  0xf0   :  { %310 = vmatprep.mubr.f32.mxu1 %v163_v34 }
  0xf1   :  { %311 = vmatmul.mubr.f32.gmra.mxu1 %v162_v35 }
 0x1ad   :  { %v306_v39 = vpop.f32.mrf.mxu1 }
 0x1ae   :  { %v307_v41 = vadd.f32 %v306_v39, %v233_v38 }
 0x1af   :  { %v308_v42 = vpop.f32.mrf.mxu1 }
 0x1b0   :  { %v317_v43 = vand.u32 2147483647, %v307_v41  ;;  %v309_v53 = vadd.f32 %v308_v42, %v237_v47 }
 0x1b1   :  { %v312_v44 = vpop.f32.mrf.mxu1 }
 0x1b2   :  { %v313_v46 = vadd.f32 %v312_v44, %v233_v38  ;;  %v363_v48 = vmul.f32 %v357_v45, %v317_v43  ;;  %v331_v49 = vmul.f32 %v324_v37, %v317_v43  ;;  %v383_v54 = vmul.f32 %v377_v50, %v317_v43 }
 0x1b3   :  { %v319_v56 = vand.u32 2147483647, %v309_v53  ;;  %v314_v58 = vpop.f32.mrf.mxu1  ;;  %v351_v3 = vmul.f32 %v345_v63, %v317_v43 }
 0x1b4   :  { %v318_v51 = vand.u32 2147483647, %v313_v46  ;;  %367 = vrot.lane.b32.xlu0 %v363_v48, %s594_s16  ;;  %335 = vrot.lane.b32.xlu1 %v331_v49, %s595_s17  ;;  %v315_v60 = vadd.f32 %v314_v58, %v237_v47 }
 0x1b6   :  { %v332_v52 = vmul.f32 %v329_v40, %v318_v51  ;;  %v364_v57 = vmul.f32 %v361_v55, %v318_v51  ;;  %v384_v61 = vmul.f32 %v381_v59, %v318_v51  ;;  %v320_v62 = vand.u32 2147483647, %v315_v60 }
 0x1b7   :  { %v352_v7 = vmul.f32 %v349_v0, %v318_v51 }
 0x1b8   :  { %387 = vrot.lane.b32.xlu0 %v383_v54, %s596_s5  ;;  %337 = vrot.lane.b32.xlu1 %v332_v52, %s595_s17 }
 0x1bc   :  { %409 = vrot.lane.b32.xlu0 %v319_v56, %s595_s17  ;;  %369 = vrot.lane.b32.xlu1 %v364_v57, %s594_s16 }
 0x1c0   :  { %389 = vrot.lane.b32.xlu1 %v384_v61, %s596_s5 }
 0x1c4   :  { %411 = vrot.lane.b32.xlu1 %v320_v62, %s595_s17 }
 0x226   :  { %v368_v1 = vpop.permute.xlu0 %367  ;;  %v336_v2 = vpop.permute.xlu1 %335 }
 0x227   :  { %v341_v4 = vadd.f32 %v336_v2, %v152_v27 }
 0x229   :  { %v353_v5 = vadd.f32 %v351_v3, %v341_v4 }
 0x22a   :  { %v338_v6 = vpop.permute.xlu1 %337  ;;  %v388_v10 = vpop.permute.xlu0 %387 }
 0x22b   :  { %v373_v8 = vadd.f32 %v368_v1, %v353_v5  ;;  %v342_v9 = vadd.f32 %v338_v6, %v158_v33 }
 0x22d   :  { %v393_v11 = vadd.f32 %v388_v10, %v373_v8  ;;  %v354_v12 = vadd.f32 %v352_v7, %v342_v9 }
 0x22e   :  { %v370_v13 = vpop.permute.xlu1 %369  ;;  %v410_v24 = vpop.permute.xlu0 %409 }
 0x22f   :  { %v397_v14 = vmin.f32 %v393_v11, 0.0  ;;  %v374_v17 = vadd.f32 %v370_v13, %v354_v12  ;;  %vm395_vm1 = vcmp.gt.f32.partialorder %v393_v11, 0.0 }
 0x231   :  { %v399_v16 = vmul.f32 1.442695, %v397_v14 }
 0x232   :  { %v390_v18 = vpop.permute.xlu1 %389 }
 0x233   :  { %515 = vpow2.f32 %v399_v16  ;;  %v394_v19 = vadd.f32 %v390_v18, %v374_v17 }
 0x235   :  { %v398_v20 = vmin.f32 %v394_v19, 0.0  ;;  %vm396_vm2 = vcmp.gt.f32.partialorder %v394_v19, 0.0 }
 0x236   :  { %v412_v30 = vpop.permute.xlu1 %411 }
 0x237   :  { %v401_v21 = vmul.f32 1.442695, %v398_v20 }
 0x239   :  { %517 = vpow2.f32 %v401_v21 }
 0x240   :  { %v516_v22 = vpop.eup %515 }
 0x241   :  { %v493_v23 = vadd.f32 -1.0, %v516_v22 }
 0x243   :  { %v405_v25 = vsel %vm395_vm1, %v393_v11, %v493_v23 }
 0x244   :  { %v415_v26 = vmul.f32 %v410_v24, %v405_v25 }
 0x246   :  { %v518_v27 = vpop.eup %517  ;;  %419 = vrot.lane.b32.xlu0 %v415_v26, %s594_s16 }
 0x247   :  { %v494_v28 = vadd.f32 -1.0, %v518_v27 }
 0x249   :  { %v406_v29 = vsel %vm396_vm2, %v394_v19, %v494_v28 }
 0x24a   :  { %v416_v31 = vmul.f32 %v412_v30, %v406_v29 }
 0x24c   :  { %421 = vrot.lane.b32.xlu1 %v416_v31, %s594_s16 }
 0x2b8   :  { %v420_v32 = vpop.permute.xlu0 %419 }
 0x2b9   :  { %v425_v33 = vsel %vm76_vm0, %v420_v32, 0.0 }
 0x2ba   :  { %426 = vadd.xlane.f32.xlu0 %v425_v33 }
 0x2be   :  { %v422_v34 = vpop.permute.xlu1 %421 }
 0x2bf   :  { %v428_v35 = vsel %vm76_vm0, %v422_v34, 0.0 }
 0x2c0   :  { %429 = vadd.xlane.f32.xlu1 %v428_v35 }
 0x343   :  { %v427_v36 = vpop.xlane.xlu0 %426 }
 0x344   :  { %v431_v37 = vadd.f32 %v427_v36, %v309_v53 }
 0x346   :  { %435 = vrot.lane.b32.xlu0 %v431_v37, %s594_s16 }
 0x349   :  { %v430_v38 = vpop.xlane.xlu1 %429 }
 0x34a   :  { %v432_v39 = vadd.f32 %v430_v38, %v315_v60 }
 0x34c   :  { %437 = vrot.lane.b32.xlu1 %v432_v39, %s594_s16 }
 0x3b8   :  { %v436_v40 = vpop.permute.xlu0 %435 }
 0x3b9   :  { %441 = vxpose.xlu0.b32.start [1/2] (short) (narrow) %v436_v40, 8 }
 0x3be   :  { %v438_v41 = vpop.permute.xlu1 %437 }
 0x3bf   :  { %442 = vxpose.xlu0.b32.end [2/2] (short) (narrow) %v438_v41, 8 }
 0x3e8   :  { %514 = vset.pattern.permute.xlu0 %v592_v15 }
 0x437   :  { %v457_v42 = vpop.trf.xlu0 }
 0x438   :  { %474 = vst.msk [vmem:[#allocation7] sm:$0x1] %vm473_vm3, %v457_v42 }
 0x439   :  { %570 = shalt.err (!%p567_p0)
}
 0x43a   :  { %484 = dma.vmem_to_hbm [thread:$0]  %s482_s19, 16, %s679_s6, [#allocation4]  }
 0x43b   :  { %583 = dma.done.wait [#allocation4], 16  }
 0x43c   :  { %584 = vsyncadd [#allocation4], 4294967280 }
 0x43d   :  { %488 = vsyncpa [#allocation3], 1 }
 0x43e   :  { %489 = vsyncpa [#allocation6], 1 }
 0x43f   :  { %490 = vsyncpa [#allocation4], 1 }

</bundles_post_ra>
